<compile_context>
chip_gen: v6e
topology: v6e:2x2x1
jax: 0.10.0
libtpu: 0.0.40
codegen_flags: <defaults>
</compile_context>

<pallas_src>
import functools

import jax
import jax.numpy as jnp
from jax.experimental import pallas as pl
from jax.experimental.pallas import tpu as pltpu


def _choose_tile_m(M: int, tile_m: int) -> int:
    """Pick an M-tile: full M for small inputs, else a multiple of 8 that keeps
    at least ~8 grid steps so megacore sharding / double buffering stay busy."""
    if M <= tile_m:
        return M                      # block dim == full array dim (always legal)
    tm = max(8, (tile_m // 8) * 8)
    while tm > 256 and pl.cdiv(M, tm) < 8:
        tm //= 2
    return tm


def _block_spec(shape, index_map, buffers=None):
    """BlockSpec with optional pipeline depth; falls back if pipeline_mode is
    unavailable in the installed JAX (pure VMEM-headroom optimization)."""
    if buffers is None:
        return pl.BlockSpec(shape, index_map)
    try:
        return pl.BlockSpec(shape, index_map, pipeline_mode=pl.Buffered(buffers))
    except TypeError:
        return pl.BlockSpec(shape, index_map)


def _patch_embed_kernel(p_ref, w_ref, b_ref, o_ref):
    # p_ref: (TM, K) streaming tile of flattened patches (compute dtype)
    # w_ref: (K,  E) resident flattened conv weight (compute dtype)
    # b_ref: (1,  E) resident bias (f32)
    # o_ref: (TM, E)
    acc = jnp.dot(p_ref[...], w_ref[...], preferred_element_type=jnp.float32)
    o_ref[...] = (acc + b_ref[...]).astype(o_ref.dtype)


def patch_embedding(x, weight, bias, patch_size, *, tile_m=512,
                    compute_dtype=jnp.bfloat16, out_dtype=None,
                    patch_buffers=2):
    """x: (B, C, H, W); weight: (E, C, P, P) (PyTorch Conv2d layout); bias: (E,).

    Returns (B, H//P, W//P, E) -- identical semantics to
    Rearrange('b c h w -> b h w c')(Conv2d(C, E, P, P, stride=P)(x)).

    compute_dtype: operand dtype fed to the MXU (default bf16; accumulation and
    bias add stay in f32).  out_dtype: output dtype (default x.dtype).
    """
    B, C, H, W = x.shape
    E = weight.shape[0]
    P = patch_size
    assert H % P == 0 and W % P == 0, "H and W must be divisible by patch_size"
    Hp, Wp = H // P, W // P
    M = B * Hp * Wp
    K = C * P * P

    out_dtype = x.dtype if out_dtype is None else out_dtype
    compute_dtype = x.dtype if compute_dtype is None else compute_dtype

    # --- patchify: (B,C,Hp,P,Wp,P) -> (B,Hp,Wp,C,P,P) -> (M, K). The (c,kh,kw)
    # flatten order matches the Conv2d weight flatten order.  The compute_dtype
    # cast rides along with the transpose (single XLA pass, no extra HBM copy).
    # TODO(synk): with NHWC activations upstream this transpose disappears.
    patches = (
        x.reshape(B, C, Hp, P, Wp, P)
         .transpose(0, 2, 4, 1, 3, 5)
         .reshape(M, K)
         .astype(compute_dtype)
    )
    w2d = weight.reshape(E, K).T.astype(compute_dtype)     # (K, E), tiny
    b2d = bias.reshape(1, E).astype(jnp.float32)           # (1, E), f32

    TM = _choose_tile_m(M, tile_m)
    grid = (pl.cdiv(M, TM),)          # ragged last block: computed, never stored

    in_specs = [
        # Streaming patches; optionally deepen the pipeline if DMA is exposed.
        _block_spec((TM, K), lambda i: (i, 0),
                    None if patch_buffers == 2 else patch_buffers),
        # Resident weight / bias: constant index_map -> single buffer is enough.
        _block_spec((K, E), lambda i: (0, 0), buffers=1),
        _block_spec((1, E), lambda i: (0, 0), buffers=1),
    ]

    out = pl.pallas_call(
        _patch_embed_kernel,
        out_shape=jax.ShapeDtypeStruct((M, E), out_dtype),
        grid_spec=pltpu.PrefetchScalarGridSpec(
            num_scalar_prefetch=0,
            grid=grid,
            in_specs=in_specs,
            out_specs=pl.BlockSpec((TM, E), lambda i: (i, 0)),
        ),
        compiler_params=pltpu.CompilerParams(
            dimension_semantics=("parallel",),           # megacore on v7x
            vmem_limit_bytes=48 * 1024 * 1024,           # safe on v5e/v6e/v7x
        ),
    )(patches, w2d, b2d)

    return out.reshape(B, Hp, Wp, E)


if __name__ == "__main__":
    # Small shapes consistent with the module: B=2, C=4, H=W=16, patch=4, embd=32
    B, C, H, W = 2, 4, 16, 16
    P, E = 4, 32

    key = jax.random.PRNGKey(0)
    kx, kw, kb = jax.random.split(key, 3)

    x = jax.random.normal(kx, (B, C, H, W), dtype=jnp.float32)
    # Deterministic param init (Conv2d-style shapes): weight (E, C, P, P), bias (E,)
    fan_in = C * P * P
    bound = 1.0 / (fan_in ** 0.5)
    weight = jax.random.uniform(kw, (E, C, P, P), jnp.float32, -bound, bound)
    bias = jax.random.uniform(kb, (E,), jnp.float32, -bound, bound)

    # Reference: lax conv + transpose (same semantics as the PyTorch module)
    ref = jax.lax.conv_general_dilated(
        x, weight, window_strides=(P, P), padding="VALID",
        dimension_numbers=("NCHW", "OIHW", "NCHW"),
    ) + bias[None, :, None, None]
    ref = jnp.transpose(ref, (0, 2, 3, 1))

    # Default path: bf16 operands, f32 accumulation, f32 output.
    fwd = jax.jit(functools.partial(patch_embedding, patch_size=P))
    out = jax.block_until_ready(fwd(x, weight, bias))
    assert out.shape == (B, H // P, W // P, E)
    assert out.dtype == x.dtype
    assert jnp.allclose(out, ref, atol=5e-2, rtol=5e-2)

    # Full-f32 operand path: tight tolerance against the reference.
    fwd_f32 = jax.jit(
        functools.partial(patch_embedding, patch_size=P, compute_dtype=jnp.float32)
    )
    out_f32 = jax.block_until_ready(fwd_f32(x, weight, bias))
    assert out_f32.shape == (B, H // P, W // P, E)
    assert jnp.allclose(out_f32, ref, atol=1e-4, rtol=1e-4)

    print("KERNEL_OK")
</pallas_src>

<mosaic_0001>
module attributes {stable_mosaic.version = 11 : i64} {
  func.func @_patch_embed_kernel(%arg0: i32, %arg1: memref<32x64xbf16, #tpu.memory_space<vmem>>, %arg2: memref<64x32xbf16, #tpu.memory_space<vmem>>, %arg3: memref<1x32xf32, #tpu.memory_space<vmem>>, %arg4: memref<32x32xf32, #tpu.memory_space<vmem>>) attributes {dimension_semantics = [#tpu.dimension_semantics<parallel>], iteration_bounds = array<i64: 1>, scalar_prefetch = 0 : i64, scratch_operands = 0 : i64, tpu.core_type = #tpu.core_type<tc>, window_params = [{transform_indices = @transform_0, window_bounds = array<i64: 32, 64>}, {pipeline_mode = #tpu.pipeline_mode<synchronous>, transform_indices = @transform_1, window_bounds = array<i64: 64, 32>}, {pipeline_mode = #tpu.pipeline_mode<synchronous>, transform_indices = @transform_2, window_bounds = array<i64: 1, 32>}, {transform_indices = @transform_3, window_bounds = array<i64: 32, 32>}]} {
    %c0 = arith.constant 0 : index
    %c0_0 = arith.constant 0 : index
    %0 = vector.load %arg1[%c0, %c0_0] : memref<32x64xbf16, #tpu.memory_space<vmem>>, vector<32x64xbf16>
    %c0_1 = arith.constant 0 : index
    %c0_2 = arith.constant 0 : index
    %1 = vector.load %arg2[%c0_1, %c0_2] : memref<64x32xbf16, #tpu.memory_space<vmem>>, vector<64x32xbf16>
    %cst = arith.constant dense<0.000000e+00> : vector<32x32xf32>
    %2 = tpu.matmul %0, %1, %cst {dimension_numbers = #tpu.dot_dimension_numbers<[1], [0], [0], [1], [0, 0, 1, 1], [], []>} : vector<32x64xbf16>, vector<64x32xbf16>, vector<32x32xf32> -> vector<32x32xf32>
    %c0_3 = arith.constant 0 : index
    %c0_4 = arith.constant 0 : index
    %3 = vector.load %arg3[%c0_3, %c0_4] : memref<1x32xf32, #tpu.memory_space<vmem>>, vector<1x32xf32>
    %4 = vector.broadcast %3 : vector<1x32xf32> to vector<32x32xf32>
    %5 = arith.addf %2, %4 : vector<32x32xf32>
    %c0_5 = arith.constant 0 : index
    %c0_6 = arith.constant 0 : index
    %6 = vector.load %arg4[%c0_5, %c0_6] : memref<32x32xf32, #tpu.memory_space<vmem>>, vector<32x32xf32>
    tpu.vector_store %arg4[%c0_5, %c0_6], %5 {strides = array<i32>} : memref<32x32xf32, #tpu.memory_space<vmem>>, vector<32x32xf32>,
    return
  }
  func.func @transform_0(%arg0: i32) -> (i32, i32) {
    %c0_i32 = arith.constant 0 : i32
    %c0_i32_0 = arith.constant 0 : i32
    return %arg0, %c0_i32 : i32, i32
  }
  func.func @transform_1(%arg0: i32) -> (i32, i32) {
    %c0_i32 = arith.constant 0 : i32
    %c0_i32_0 = arith.constant 0 : i32
    %c0_i32_1 = arith.constant 0 : i32
    return %c0_i32, %c0_i32_0 : i32, i32
  }
  func.func @transform_2(%arg0: i32) -> (i32, i32) {
    %c0_i32 = arith.constant 0 : i32
    %c0_i32_0 = arith.constant 0 : i32
    %c0_i32_1 = arith.constant 0 : i32
    return %c0_i32, %c0_i32_0 : i32, i32
  }
  func.func @transform_3(%arg0: i32) -> (i32, i32) {
    %c0_i32 = arith.constant 0 : i32
    %c0_i32_0 = arith.constant 0 : i32
    return %arg0, %c0_i32 : i32, i32
  }
}

</mosaic_0001>

<bundles_post_ra>
// kernel: patch_embedding.1
= control target key start
LH: loop header
LB: loop body
LE: loop exit
PB: predicated region body
PF: predicated region fallthrough
CT: control target
= control target key end

     0   :  { %vm69_vm0 = vcmask 523264   ;;  %s251_s0 = inlined_call_operand.vmem [shape: bf16[32,64], index: 0, kind: input, shape index: {}]   ;;  %s252_s1 = inlined_call_operand.vmem [shape: bf16[64,32], index: 1, kind: input, shape index: {}]   ;;  %s253_s2 = inlined_call_operand.vmem [shape: f32[1,32], index: 2, kind: input, shape index: {}]   ;;  %s254_s3 = inlined_call_operand.hbm [shape: f32[32,32], index: 3, kind: output, shape index: {}]  }
   0x1   :  { %v176_v0 = vld [vmem:[%s252_s1 + $0x18] sm:$0xff]   ;;  %v177_v1 = vld [vmem:[%s252_s1 + $0x10] sm:$0xff]   ;;  %v178_v2 = vld [vmem:[%s252_s1 + $0x8] sm:$0xff]  }
   0x2   :  { %161 = vmatprep.subr.bf16.mxu0 %v176_v0  ;;  %v180_v3 = vld [vmem:[%s251_s0] sm:$0xff]  }
   0x3   :  { %162 = vmatpush3.bf16.msra.mxu0 %v176_v0  ;;  %169 = vmatprep.mubr.msk.bf16.mxu0 %vm69_vm0, %v180_v3 }
   0x4   :  { %163 = vmatprep.subr.bf16.mxu0 %v177_v1 }
   0x5   :  { %8 = vsyncpa [#allocation3], 0  ;;  %v179_v4 = vld [vmem:[%s252_s1] sm:$0xff]   ;;  %v181_v5 = vld [vmem:[%s251_s0 + $0x8] sm:$0xff]   ;;  %vm125_vm1 = vcmask 261120   ;;  %s204_s26 = smov [#allocation2]  }
   0x6   :  { %v146_v6 = vld [vmem:[%s253_s2] ss:$0 sm:$0xff]  ;;  %s135_s1 = sshll.u32 %s204_s26, 4  ;;  %s136_s1 = int_to_ptr.vmem [resolvable:$true] %s135_s1 }
   0x7   :  { %164 = vmatpush3.bf16.msra.mxu0 %v177_v1  ;;  %s182_s0 = scalar_lea.vmem %s136_s1, 512  ;;  %p187_p1 = scmp.lt.s32.totalorder %s136_s1, %s136_s1 }
   0x8   :  { %165 = vmatprep.subr.bf16.mxu0 %v178_v2  ;;  %p183_p0 = scmp.ne.s32.totalorder %s136_s1, %s182_s0  ;;  %p188_p2 = scmp.lt.s32.totalorder %s182_s0, %s182_s0 }
   0xa   :  { %p189_p3 = por %p188_p2, %p187_p1 }
   0xb   :  { %166 = vmatpush3.bf16.msra.mxu0 %v178_v2 }
   0xc   :  { %167 = vmatprep.subr.bf16.mxu0 %v179_v4  ;;  %p190_p4 = pnand %p189_p3, %p183_p0 }
   0xf   :  { %168 = vmatpush3.bf16.msra.mxu0 %v179_v4 }
  0x12   :  { %170 = vmatmul.mubr.msk.bf16.vlgmr.msra.gmra.mxu0 %vm69_vm0, %v181_v5 }
  0xd2   :  { %v171_v7 = vpop.f32.mrf.mxu0 }
  0xd3   :  { %v119_v8 = vadd.f32 %v171_v7, %v146_v6 }
  0xd4   :  { %v110_v9 = vpop.f32.mrf.mxu0 }
  0xd5   :  { %128 = vst.msk [vmem:[#allocation2 + $0x10] sm:$0xff] %vm125_vm1, %v119_v8  ;;  %v111_v10 = vadd.f32 %v146_v6, %v110_v9 }
  0xd6   :  { %v172_v11 = vpop.f32.mrf.mxu0 }
  0xd7   :  { %126 = vst.msk [vmem:[#allocation2] sm:$0xff] %vm125_vm1, %v111_v10  ;;  %v122_v12 = vadd.f32 %v172_v11, %v146_v6 }
  0xd8   :  { %v113_v13 = vpop.f32.mrf.mxu0 }
  0xd9   :  { %129 = vst.msk [vmem:[#allocation2 + $0x18] sm:$0xff] %vm125_vm1, %v122_v12  ;;  %v114_v14 = vadd.f32 %v146_v6, %v113_v13 }
  0xdb   :  { %127 = vst.msk [vmem:[#allocation2 + $0x8] sm:$0xff] %vm125_vm1, %v114_v14 }
  0xdc   :  { %193 = shalt.err (!%p190_p4)
}
  0xdd   :  { %s205_s2 = smov 128   ;;  %s206_s27 = smov 8  }
  0xde   :  { %141 = dma.vmem_to_hbm [thread:$0]  %s136_s1, 512, %s254_s3, [#allocation3], %s205_s2, %s205_s2, %s206_s27  }
  0xdf   :  { %202 = dma.done.wait [#allocation3], 512  }
  0xe0   :  { %203 = vsyncadd [#allocation3], 4294966784 }
  0xe1   :  { %145 = vsyncpa [#allocation3], 1 }

</bundles_post_ra>
